<compile_context>
chip_gen: v7x
topology: tpu7x:2x2x1
jax: 0.10.0
libtpu: 0.0.40
codegen_flags: <defaults>
</compile_context>

<pallas_src>
import functools

import jax
import jax.numpy as jnp
from jax.experimental import pallas as pl
from jax.experimental.pallas import tpu as pltpu


def _erf(z):
    # Abramowitz & Stegun 7.1.26 (exp/abs/where only -> always lowers on Mosaic), f32.
    a1, a2, a3, a4, a5 = 0.254829592, -0.284496736, 1.421413741, -1.453152027, 1.061405429
    p = 0.3275911
    sgn = jnp.where(z >= 0.0, 1.0, -1.0)
    az = jnp.abs(z)
    t = 1.0 / (1.0 + p * az)
    poly = ((((a5 * t + a4) * t + a3) * t + a2) * t + a1) * t
    return sgn * (1.0 - poly * jnp.exp(-az * az))


def _layernorm(v, eps=1e-5):
    # PyTorch nn.LayerNorm over the last dim (biased variance); affine folded into weights.
    mu = jnp.mean(v, axis=-1, keepdims=True)
    var = jnp.mean((v - mu) ** 2, axis=-1, keepdims=True)
    return (v - mu) * jax.lax.rsqrt(var + eps)


def _block_id(idx, block, nblocks):
    # idx // block for 0 <= idx < nblocks*block, via unrolled threshold compares
    # (avoids vector integer division).
    bid = jnp.zeros(idx.shape, jnp.int32)
    for t in range(1, nblocks):
        bid = bid + (idx >= t * block).astype(jnp.int32)
    return bid


def transformer_block_kernel(x_ref, wqkv_ref, wo_ref, w1_ref, w2_ref, bias_ref, out_ref,
                             *, heads):
    B, S, F = x_ref.shape
    BS = B * S
    HS = heads * S
    DH = F // heads
    E = w1_ref.shape[1]

    x = x_ref[...].astype(jnp.float32).reshape(BS, F)              # (B*S, F)

    biases = bias_ref[...]                                         # (3, max(3F, E)) f32
    b_qkv = biases[0:1, :3 * F]                                    # LN1-beta folded bias
    b_out = biases[1:2, :F]                                        # fc_out bias
    b_fc1 = biases[2:3, :E]                                        # LN2-beta folded bias

    # ---- sublayer 1: LN1 (affine folded) -> MHA -> (dropout=id) -> +res
    h = _layernorm(x)
    qkv = jnp.dot(h.astype(jnp.bfloat16), wqkv_ref[...],
                  preferred_element_type=jnp.float32) + b_qkv      # (B*S, 3F)
    q = qkv[:, :F]                  # 1/sqrt(F) score scale folded into these columns
    k = qkv[:, F:2 * F]
    v = qkv[:, 2 * F:]

    # Per-head column mask, generated in-kernel (no mask DMA): row m of the per-batch
    # (H*S, F) slab belongs to head m//S and keeps only columns [head*DH, head*DH+DH).
    r_i = jax.lax.broadcasted_iota(jnp.int32, (HS, F), 0)
    c_i = jax.lax.broadcasted_iota(jnp.int32, (HS, F), 1)
    head_mask = (_block_id(r_i, S, heads) == _block_id(c_i, DH, heads)).astype(jnp.float32)

    def expand_masked(a):
        # (B*S, F) -> (B, H*S, F): each batch's S rows tiled per head, masked to that head's cols.
        a3 = jnp.broadcast_to(a.reshape(B, 1, S, F), (B, heads, S, F)).reshape(B, HS, F)
        return (a3 * head_mask[None]).astype(jnp.bfloat16)

    kx = expand_masked(k)                                          # (B, H*S, F)
    vx = expand_masked(v)                                          # (B, H*S, F)
    q3 = q.reshape(B, S, F).astype(jnp.bfloat16)

    # Batched scores: batch is a real einsum batch dim (no cross-batch bias needed) and
    # the contraction is on the last dim of both operands (no kx.T materialization).
    s = jnp.einsum('bqf,bkf->bqk', q3, kx,
                   preferred_element_type=jnp.float32).reshape(BS, HS)   # (B*S, H*S)
    # Row-wide max: softmax is shift-invariant per head-group and exp() cannot overflow.
    s = s - jnp.max(s, axis=-1, keepdims=True)
    e = jnp.exp(s)
    # Per-head softmax denominators via a static block-diagonal ones matrix (iota-built).
    g_r = jax.lax.broadcasted_iota(jnp.int32, (HS, HS), 0)
    g_c = jax.lax.broadcasted_iota(jnp.int32, (HS, HS), 1)
    gsum = (_block_id(g_r, S, heads) == _block_id(g_c, S, heads)).astype(jnp.float32)
    denom = jnp.dot(e, gsum, preferred_element_type=jnp.float32)         # (B*S, H*S)
    p = (e * pl.reciprocal(denom + 1e-30, approx=True)).reshape(B, S, HS)
    ctx = jnp.einsum('bqk,bkf->bqf', p.astype(jnp.bfloat16), vx,
                     preferred_element_type=jnp.float32).reshape(BS, F)  # head-concat ctx
    att = jnp.dot(ctx.astype(jnp.bfloat16), wo_ref[...],
                  preferred_element_type=jnp.float32) + b_out
    x1 = x + att                                   # dropout(p=0.1): identity (eval mode)

    # ---- sublayer 2: LN2 (affine folded) -> fc1 -> GELU -> fc2 -> (dropout=id) -> +res
    h2 = _layernorm(x1)
    f = jnp.dot(h2.astype(jnp.bfloat16), w1_ref[...],
                preferred_element_type=jnp.float32) + b_fc1
    f = 0.5 * f * (1.0 + _erf(f * 0.7071067811865476))             # exact-erf GELU (f32)
    f = jnp.dot(f.astype(jnp.bfloat16), w2_ref[...], preferred_element_type=jnp.float32)

    out_ref[...] = (x1 + f).reshape(B, S, F).astype(out_ref.dtype)  # single full-view store


def transformer_block(x, params, *, heads):
    B, S, F = x.shape
    E = params["w1"].shape[1]
    BS, HS = B * S, heads * S
    kernel = functools.partial(transformer_block_kernel, heads=heads)

    args = (x, params["wqkv"], params["wo_t"], params["w1"], params["w2"], params["biases"])
    vmem = lambda: pl.BlockSpec(memory_space=pltpu.MemorySpace.VMEM)

    flops = 2 * (BS * F * 3 * F        # QKV projection
                 + BS * HS * F         # scores
                 + BS * HS * HS        # group-sum denominators
                 + BS * HS * F         # context
                 + BS * F * F          # fc_out
                 + BS * F * E          # fc1
                 + BS * E * F)         # fc2
    transcendentals = 2 * BS * HS + BS * E + 2 * BS       # exp/recip (softmax), erf, rsqrt
    bytes_accessed = (sum(int(a.size) * a.dtype.itemsize for a in args)
                      + int(x.size) * x.dtype.itemsize)

    return pl.pallas_call(
        kernel,
        out_shape=jax.ShapeDtypeStruct((B, S, F), x.dtype),
        in_specs=[vmem() for _ in args],
        out_specs=vmem(),
        cost_estimate=pl.CostEstimate(flops=flops, transcendentals=transcendentals,
                                      bytes_accessed=bytes_accessed),
    )(*args)


if __name__ == "__main__":
    # n_features=20 (divisible by heads=5), seq_len=8, forward_expansion=40, batch=2
    B, S, F, H, E = 2, 8, 20, 5, 40
    DH = F // H

    key = jax.random.PRNGKey(0)
    ks = jax.random.split(key, 8)
    x = jax.random.normal(ks[0], (B, S, F), jnp.float32)

    def lin_init(k, out_dim, in_dim):
        # PyTorch nn.Linear default: U(-1/sqrt(fan_in), 1/sqrt(fan_in)), weight (out, in)
        bound = 1.0 / (in_dim ** 0.5)
        return jax.random.uniform(k, (out_dim, in_dim), jnp.float32, -bound, bound)

    # SelfAttention params (per-head Linear(DH, DH, bias=False), shared across heads)
    wq_h = lin_init(ks[1], DH, DH)
    wk_h = lin_init(ks[2], DH, DH)
    wv_h = lin_init(ks[3], DH, DH)
    wo = lin_init(ks[4], F, F)                                    # fc_out weight (out, in)
    bo = jax.random.uniform(ks[5], (F,), jnp.float32, -1.0 / F ** 0.5, 1.0 / F ** 0.5)
    w1 = lin_init(ks[6], E, F)                                    # fc1: Linear(F, E, bias=False)
    w2 = lin_init(ks[7], F, E)                                    # fc2: Linear(E, F, bias=False)
    ln1_g, ln1_b = jnp.ones((F,), jnp.float32), jnp.zeros((F,), jnp.float32)  # LN default init
    ln2_g, ln2_b = jnp.ones((F,), jnp.float32), jnp.zeros((F,), jnp.float32)

    # Block-diagonal right-multiplication projections (PyTorch computes x @ W.T), packed
    # into one (F, 3F) weight; the 1/sqrt(n_features) score scale folded into the Q block.
    eye_h = jnp.eye(H, dtype=jnp.float32)
    scale = 1.0 / (F ** 0.5)
    wqkv = jnp.concatenate([jnp.kron(eye_h, wq_h.T) * scale,
                            jnp.kron(eye_h, wk_h.T),
                            jnp.kron(eye_h, wv_h.T)], axis=1)     # (F, 3F)

    # Fold the LayerNorm affines into the downstream weights / bias rows.
    wqkv_eff = ln1_g[:, None] * wqkv
    b_qkv = ln1_b @ wqkv                                          # (3F,)
    w1_eff = ln2_g[:, None] * w1.T                                # (F, E)
    b_fc1 = ln2_b @ w1.T                                          # (E,)

    # Pack the remaining small bias vectors into a single operand.
    Wb = max(3 * F, E, F)
    biases = jnp.zeros((3, Wb), jnp.float32)
    biases = biases.at[0, :3 * F].set(b_qkv).at[1, :F].set(bo).at[2, :E].set(b_fc1)

    params = dict(
        wqkv=wqkv_eff.astype(jnp.bfloat16),     # MXU operands in bf16, f32 accumulate
        wo_t=wo.T.astype(jnp.bfloat16),
        w1=w1_eff.astype(jnp.bfloat16),
        w2=w2.T.astype(jnp.bfloat16),
        biases=biases,
    )

    # TODO(synk): nn.Dropout(p=0.1) is stochastic; eval-mode identity is used here.
    out = transformer_block(x, params, heads=H)
    jax.block_until_ready(out)

    # Pure-JAX f32 reference of the same forward pass (per-head formulation, exact erf).
    def reference(xv):
        def ln(v, g, b):
            mu = v.mean(-1, keepdims=True)
            var = ((v - mu) ** 2).mean(-1, keepdims=True)
            return (v - mu) / jnp.sqrt(var + 1e-5) * g + b
        h = ln(xv, ln1_g, ln1_b).reshape(B, S, H, DH)
        qh = jnp.einsum('bshd,ed->bshe', h, wq_h)
        kh = jnp.einsum('bshd,ed->bshe', h, wk_h)
        vh = jnp.einsum('bshd,ed->bshe', h, wv_h)
        sc = jnp.einsum('bqhe,bkhe->bhqk', qh, kh) / (F ** 0.5)
        pr = jax.nn.softmax(sc, axis=-1)
        ctx = jnp.einsum('bhqk,bkhe->bqhe', pr, vh).reshape(B, S, F)
        x1 = xv + ctx @ wo.T + bo
        f = ln(x1, ln2_g, ln2_b) @ w1.T
        f = 0.5 * f * (1.0 + jax.scipy.special.erf(f / jnp.sqrt(2.0)))
        return x1 + f @ w2.T

    ref = reference(x)
    err = float(jnp.max(jnp.abs(out - ref)))

    assert out.shape == (B, S, F) and out.dtype == jnp.float32
    assert bool(jnp.all(jnp.isfinite(out)))
    assert err < 5e-2, f"max abs err vs f32 reference: {err}"
    print("KERNEL_OK")
</pallas_src>

<mosaic_0001>
module attributes {stable_mosaic.version = 11 : i64} {
  func.func @transformer_block_kernel(%arg0: memref<2x8x20xf32, #tpu.memory_space<vmem>>, %arg1: memref<20x60xbf16, #tpu.memory_space<vmem>>, %arg2: memref<20x20xbf16, #tpu.memory_space<vmem>>, %arg3: memref<20x40xbf16, #tpu.memory_space<vmem>>, %arg4: memref<40x20xbf16, #tpu.memory_space<vmem>>, %arg5: memref<3x60xf32, #tpu.memory_space<vmem>>, %arg6: memref<2x8x20xf32, #tpu.memory_space<vmem>>) attributes {dimension_semantics = [], scalar_prefetch = 0 : i64, scratch_operands = 0 : i64, tpu.core_type = #tpu.core_type<tc>} {
    %c0 = arith.constant 0 : index
    %c0_0 = arith.constant 0 : index
    %c0_1 = arith.constant 0 : index
    %0 = vector.load %arg0[%c0, %c0_0, %c0_1] : memref<2x8x20xf32, #tpu.memory_space<vmem>>, vector<2x8x20xf32>
    %1 = vector.shape_cast %0 : vector<2x8x20xf32> to vector<16x20xf32>
    %c0_2 = arith.constant 0 : index
    %c0_3 = arith.constant 0 : index
    %2 = vector.load %arg5[%c0_2, %c0_3] : memref<3x60xf32, #tpu.memory_space<vmem>>, vector<3x60xf32>
    %3 = vector.extract_strided_slice %2 {offsets = [0, 0], sizes = [1, 60], strides = [1, 1]} : vector<3x60xf32> to vector<1x60xf32>
    %4 = vector.extract_strided_slice %2 {offsets = [1, 0], sizes = [1, 20], strides = [1, 1]} : vector<3x60xf32> to vector<1x20xf32>
    %5 = vector.extract_strided_slice %2 {offsets = [2, 0], sizes = [1, 40], strides = [1, 1]} : vector<3x60xf32> to vector<1x40xf32>
    %cst = arith.constant dense<0.000000e+00> : vector<16xf32>
    %6 = vector.multi_reduction <add>, %1, %cst [1] : vector<16x20xf32> to vector<16xf32>
    %7 = vector.shape_cast %6 : vector<16xf32> to vector<16x1xf32>
    %cst_4 = arith.constant 2.000000e+01 : f32
    %8 = vector.broadcast %cst_4 : f32 to vector<16x1xf32>
    %9 = arith.divf %7, %8 : vector<16x1xf32>
    %10 = vector.broadcast %9 : vector<16x1xf32> to vector<16x20xf32>
    %11 = arith.subf %1, %10 : vector<16x20xf32>
    %12 = arith.mulf %11, %11 : vector<16x20xf32>
    %cst_5 = arith.constant dense<0.000000e+00> : vector<16xf32>
    %13 = vector.multi_reduction <add>, %12, %cst_5 [1] : vector<16x20xf32> to vector<16xf32>
    %14 = vector.shape_cast %13 : vector<16xf32> to vector<16x1xf32>
    %cst_6 = arith.constant 2.000000e+01 : f32
    %15 = vector.broadcast %cst_6 : f32 to vector<16x1xf32>
    %16 = arith.divf %14, %15 : vector<16x1xf32>
    %17 = vector.broadcast %9 : vector<16x1xf32> to vector<16x20xf32>
    %18 = arith.subf %1, %17 : vector<16x20xf32>
    %cst_7 = arith.constant 9.99999974E-6 : f32
    %19 = vector.broadcast %cst_7 : f32 to vector<16x1xf32>
    %20 = arith.addf %16, %19 : vector<16x1xf32>
    %21 = math.rsqrt %20 : vector<16x1xf32>
    %22 = vector.broadcast %21 : vector<16x1xf32> to vector<16x20xf32>
    %23 = arith.mulf %18, %22 : vector<16x20xf32>
    %24 = arith.truncf %23 : vector<16x20xf32> to vector<16x20xbf16>
    %c0_8 = arith.constant 0 : index
    %c0_9 = arith.constant 0 : index
    %25 = vector.load %arg1[%c0_8, %c0_9] : memref<20x60xbf16, #tpu.memory_space<vmem>>, vector<20x60xbf16>
    %cst_10 = arith.constant dense<0.000000e+00> : vector<16x60xf32>
    %26 = tpu.matmul %24, %25, %cst_10 {dimension_numbers = #tpu.dot_dimension_numbers<[1], [0], [0], [1], [0, 0, 1, 1], [], []>} : vector<16x20xbf16>, vector<20x60xbf16>, vector<16x60xf32> -> vector<16x60xf32>
    %27 = vector.broadcast %3 : vector<1x60xf32> to vector<16x60xf32>
    %28 = arith.addf %26, %27 : vector<16x60xf32>
    %29 = vector.extract_strided_slice %28 {offsets = [0, 0], sizes = [16, 20], strides = [1, 1]} : vector<16x60xf32> to vector<16x20xf32>
    %30 = vector.extract_strided_slice %28 {offsets = [0, 20], sizes = [16, 20], strides = [1, 1]} : vector<16x60xf32> to vector<16x20xf32>
    %31 = vector.extract_strided_slice %28 {offsets = [0, 40], sizes = [16, 20], strides = [1, 1]} : vector<16x60xf32> to vector<16x20xf32>
    %32 = tpu.iota {dimensions = array<i32: 0>} : vector<40x20xi32>
    %33 = tpu.iota {dimensions = array<i32: 1>} : vector<40x20xi32>
    %c0_i32 = arith.constant 0 : i32
    %34 = vector.broadcast %c0_i32 : i32 to vector<40x20xi32>
    %c8_i32 = arith.constant 8 : i32
    %35 = vector.broadcast %c8_i32 : i32 to vector<40x20xi32>
    %36 = arith.cmpi sge, %32, %35 : vector<40x20xi32>
    %37 = arith.extui %36 : vector<40x20xi1> to vector<40x20xi32>
    %38 = arith.addi %34, %37 : vector<40x20xi32>
    %c16_i32 = arith.constant 16 : i32
    %39 = vector.broadcast %c16_i32 : i32 to vector<40x20xi32>
    %40 = arith.cmpi sge, %32, %39 : vector<40x20xi32>
    %41 = arith.extui %40 : vector<40x20xi1> to vector<40x20xi32>
    %42 = arith.addi %38, %41 : vector<40x20xi32>
    %c24_i32 = arith.constant 24 : i32
    %43 = vector.broadcast %c24_i32 : i32 to vector<40x20xi32>
    %44 = arith.cmpi sge, %32, %43 : vector<40x20xi32>
    %45 = arith.extui %44 : vector<40x20xi1> to vector<40x20xi32>
    %46 = arith.addi %42, %45 : vector<40x20xi32>
    %c32_i32 = arith.constant 32 : i32
    %47 = vector.broadcast %c32_i32 : i32 to vector<40x20xi32>
    %48 = arith.cmpi sge, %32, %47 : vector<40x20xi32>
    %49 = arith.extui %48 : vector<40x20xi1> to vector<40x20xi32>
    %50 = arith.addi %46, %49 : vector<40x20xi32>
    %c0_i32_11 = arith.constant 0 : i32
    %51 = vector.broadcast %c0_i32_11 : i32 to vector<40x20xi32>
    %c4_i32 = arith.constant 4 : i32
    %52 = vector.broadcast %c4_i32 : i32 to vector<40x20xi32>
    %53 = arith.cmpi sge, %33, %52 : vector<40x20xi32>
    %54 = arith.extui %53 : vector<40x20xi1> to vector<40x20xi32>
    %55 = arith.addi %51, %54 : vector<40x20xi32>
    %c8_i32_12 = arith.constant 8 : i32
    %56 = vector.broadcast %c8_i32_12 : i32 to vector<40x20xi32>
    %57 = arith.cmpi sge, %33, %56 : vector<40x20xi32>
    %58 = arith.extui %57 : vector<40x20xi1> to vector<40x20xi32>
    %59 = arith.addi %55, %58 : vector<40x20xi32>
    %c12_i32 = arith.constant 12 : i32
    %60 = vector.broadcast %c12_i32 : i32 to vector<40x20xi32>
    %61 = arith.cmpi sge, %33, %60 : vector<40x20xi32>
    %62 = arith.extui %61 : vector<40x20xi1> to vector<40x20xi32>
    %63 = arith.addi %59, %62 : vector<40x20xi32>
    %c16_i32_13 = arith.constant 16 : i32
    %64 = vector.broadcast %c16_i32_13 : i32 to vector<40x20xi32>
    %65 = arith.cmpi sge, %33, %64 : vector<40x20xi32>
    %66 = arith.extui %65 : vector<40x20xi1> to vector<40x20xi32>
    %67 = arith.addi %63, %66 : vector<40x20xi32>
    %68 = arith.cmpi eq, %50, %67 : vector<40x20xi32>
    %69 = arith.extui %68 : vector<40x20xi1> to vector<40x20xi32>
    %70 = arith.sitofp %69 : vector<40x20xi32> to vector<40x20xf32>
    %71 = vector.shape_cast %30 : vector<16x20xf32> to vector<2x1x8x20xf32>
    %72 = vector.shape_cast %71 : vector<2x1x8x20xf32> to vector<2x1x8x20xf32>
    %73 = vector.broadcast %72 : vector<2x1x8x20xf32> to vector<2x5x8x20xf32>
    %74 = vector.shape_cast %73 : vector<2x5x8x20xf32> to vector<2x40x20xf32>
    %75 = vector.shape_cast %70 : vector<40x20xf32> to vector<1x40x20xf32>
    %76 = vector.broadcast %75 : vector<1x40x20xf32> to vector<2x40x20xf32>
    %77 = arith.mulf %74, %76 : vector<2x40x20xf32>
    %78 = arith.truncf %77 : vector<2x40x20xf32> to vector<2x40x20xbf16>
    %79 = vector.shape_cast %31 : vector<16x20xf32> to vector<2x1x8x20xf32>
    %80 = vector.shape_cast %79 : vector<2x1x8x20xf32> to vector<2x1x8x20xf32>
    %81 = vector.broadcast %80 : vector<2x1x8x20xf32> to vector<2x5x8x20xf32>
    %82 = vector.shape_cast %81 : vector<2x5x8x20xf32> to vector<2x40x20xf32>
    %83 = vector.shape_cast %70 : vector<40x20xf32> to vector<1x40x20xf32>
    %84 = vector.broadcast %83 : vector<1x40x20xf32> to vector<2x40x20xf32>
    %85 = arith.mulf %82, %84 : vector<2x40x20xf32>
    %86 = arith.truncf %85 : vector<2x40x20xf32> to vector<2x40x20xbf16>
    %87 = vector.shape_cast %29 : vector<16x20xf32> to vector<2x8x20xf32>
    %88 = arith.truncf %87 : vector<2x8x20xf32> to vector<2x8x20xbf16>
    "tpu.trace_start"() <{level = 10 : i32, message = "bqf,bkf->bqk"}> : () -> ()
    %cst_14 = arith.constant dense<0.000000e+00> : vector<2x8x40xf32>
    %89 = tpu.matmul %88, %78, %cst_14 {dimension_numbers = #tpu.dot_dimension_numbers<[2], [2], [1], [1], [0, 0, 0, 1, 1, 1], [0], [0]>} : vector<2x8x20xbf16>, vector<2x40x20xbf16>, vector<2x8x40xf32> -> vector<2x8x40xf32>
    "tpu.trace_stop"() : () -> ()
    %90 = vector.shape_cast %89 : vector<2x8x40xf32> to vector<16x40xf32>
    %cst_15 = arith.constant dense<0xFF800000> : vector<16xf32>
    %91 = vector.multi_reduction <maximumf>, %90, %cst_15 [1] : vector<16x40xf32> to vector<16xf32>
    %92 = vector.shape_cast %91 : vector<16xf32> to vector<16x1xf32>
    %93 = vector.broadcast %92 : vector<16x1xf32> to vector<16x40xf32>
    %94 = arith.subf %90, %93 : vector<16x40xf32>
    %95 = math.exp %94 : vector<16x40xf32>
    %96 = tpu.iota {dimensions = array<i32: 0>} : vector<40x40xi32>
    %97 = tpu.iota {dimensions = array<i32: 1>} : vector<40x40xi32>
    %c0_i32_16 = arith.constant 0 : i32
    %98 = vector.broadcast %c0_i32_16 : i32 to vector<40x40xi32>
    %c8_i32_17 = arith.constant 8 : i32
    %99 = vector.broadcast %c8_i32_17 : i32 to vector<40x40xi32>
    %100 = arith.cmpi sge, %96, %99 : vector<40x40xi32>
    %101 = arith.extui %100 : vector<40x40xi1> to vector<40x40xi32>
    %102 = arith.addi %98, %101 : vector<40x40xi32>
    %c16_i32_18 = arith.constant 16 : i32
    %103 = vector.broadcast %c16_i32_18 : i32 to vector<40x40xi32>
    %104 = arith.cmpi sge, %96, %103 : vector<40x40xi32>
    %105 = arith.extui %104 : vector<40x40xi1> to vector<40x40xi32>
    %106 = arith.addi %102, %105 : vector<40x40xi32>
    %c24_i32_19 = arith.constant 24 : i32
    %107 = vector.broadcast %c24_i32_19 : i32 to vector<40x40xi32>
    %108 = arith.cmpi sge, %96, %107 : vector<40x40xi32>
    %109 = arith.extui %108 : vector<40x40xi1> to vector<40x40xi32>
    %110 = arith.addi %106, %109 : vector<40x40xi32>
    %c32_i32_20 = arith.constant 32 : i32
    %111 = vector.broadcast %c32_i32_20 : i32 to vector<40x40xi32>
    %112 = arith.cmpi sge, %96, %111 : vector<40x40xi32>
    %113 = arith.extui %112 : vector<40x40xi1> to vector<40x40xi32>
    %114 = arith.addi %110, %113 : vector<40x40xi32>
    %c0_i32_21 = arith.constant 0 : i32
    %115 = vector.broadcast %c0_i32_21 : i32 to vector<40x40xi32>
    %c8_i32_22 = arith.constant 8 : i32
    %116 = vector.broadcast %c8_i32_22 : i32 to vector<40x40xi32>
    %117 = arith.cmpi sge, %97, %116 : vector<40x40xi32>
    %118 = arith.extui %117 : vector<40x40xi1> to vector<40x40xi32>
    %119 = arith.addi %115, %118 : vector<40x40xi32>
    %c16_i32_23 = arith.constant 16 : i32
    %120 = vector.broadcast %c16_i32_23 : i32 to vector<40x40xi32>
    %121 = arith.cmpi sge, %97, %120 : vector<40x40xi32>
    %122 = arith.extui %121 : vector<40x40xi1> to vector<40x40xi32>
    %123 = arith.addi %119, %122 : vector<40x40xi32>
    %c24_i32_24 = arith.constant 24 : i32
    %124 = vector.broadcast %c24_i32_24 : i32 to vector<40x40xi32>
    %125 = arith.cmpi sge, %97, %124 : vector<40x40xi32>
    %126 = arith.extui %125 : vector<40x40xi1> to vector<40x40xi32>
    %127 = arith.addi %123, %126 : vector<40x40xi32>
    %c32_i32_25 = arith.constant 32 : i32
    %128 = vector.broadcast %c32_i32_25 : i32 to vector<40x40xi32>
    %129 = arith.cmpi sge, %97, %128 : vector<40x40xi32>
    %130 = arith.extui %129 : vector<40x40xi1> to vector<40x40xi32>
    %131 = arith.addi %127, %130 : vector<40x40xi32>
    %132 = arith.cmpi eq, %114, %131 : vector<40x40xi32>
    %133 = arith.extui %132 : vector<40x40xi1> to vector<40x40xi32>
    %134 = arith.sitofp %133 : vector<40x40xi32> to vector<40x40xf32>
    %cst_26 = arith.constant dense<0.000000e+00> : vector<16x40xf32>
    %135 = tpu.matmul %95, %134, %cst_26 {dimension_numbers = #tpu.dot_dimension_numbers<[1], [0], [0], [1], [0, 0, 1, 1], [], []>} : vector<16x40xf32>, vector<40x40xf32>, vector<16x40xf32> -> vector<16x40xf32>
    %cst_27 = arith.constant 1.000000e-30 : f32
    %136 = vector.broadcast %cst_27 : f32 to vector<16x40xf32>
    %137 = arith.addf %135, %136 : vector<16x40xf32>
    %138 = tpu.reciprocal %137 {approx = true} : vector<16x40xf32> -> vector<16x40xf32>
    %139 = arith.mulf %95, %138 : vector<16x40xf32>
    %140 = vector.shape_cast %139 : vector<16x40xf32> to vector<2x8x40xf32>
    %141 = arith.truncf %140 : vector<2x8x40xf32> to vector<2x8x40xbf16>
    "tpu.trace_start"() <{level = 10 : i32, message = "bqk,bkf->bqf"}> : () -> ()
    %cst_28 = arith.constant dense<0.000000e+00> : vector<2x8x20xf32>
    %142 = tpu.matmul %141, %86, %cst_28 {dimension_numbers = #tpu.dot_dimension_numbers<[2], [1], [1], [2], [0, 0, 0, 1, 1, 2], [0], [0]>} : vector<2x8x40xbf16>, vector<2x40x20xbf16>, vector<2x8x20xf32> -> vector<2x8x20xf32>
    "tpu.trace_stop"() : () -> ()
    %143 = vector.shape_cast %142 : vector<2x8x20xf32> to vector<16x20xf32>
    %144 = arith.truncf %143 : vector<16x20xf32> to vector<16x20xbf16>
    %c0_29 = arith.constant 0 : index
    %c0_30 = arith.constant 0 : index
    %145 = vector.load %arg2[%c0_29, %c0_30] : memref<20x20xbf16, #tpu.memory_space<vmem>>, vector<20x20xbf16>
    %cst_31 = arith.constant dense<0.000000e+00> : vector<16x20xf32>
    %146 = tpu.matmul %144, %145, %cst_31 {dimension_numbers = #tpu.dot_dimension_numbers<[1], [0], [0], [1], [0, 0, 1, 1], [], []>} : vector<16x20xbf16>, vector<20x20xbf16>, vector<16x20xf32> -> vector<16x20xf32>
    %147 = vector.broadcast %4 : vector<1x20xf32> to vector<16x20xf32>
    %148 = arith.addf %146, %147 : vector<16x20xf32>
    %149 = arith.addf %1, %148 : vector<16x20xf32>
    %cst_32 = arith.constant dense<0.000000e+00> : vector<16xf32>
    %150 = vector.multi_reduction <add>, %149, %cst_32 [1] : vector<16x20xf32> to vector<16xf32>
    %151 = vector.shape_cast %150 : vector<16xf32> to vector<16x1xf32>
    %cst_33 = arith.constant 2.000000e+01 : f32
    %152 = vector.broadcast %cst_33 : f32 to vector<16x1xf32>
    %153 = arith.divf %151, %152 : vector<16x1xf32>
    %154 = vector.broadcast %153 : vector<16x1xf32> to vector<16x20xf32>
    %155 = arith.subf %149, %154 : vector<16x20xf32>
    %156 = arith.mulf %155, %155 : vector<16x20xf32>
    %cst_34 = arith.constant dense<0.000000e+00> : vector<16xf32>
    %157 = vector.multi_reduction <add>, %156, %cst_34 [1] : vector<16x20xf32> to vector<16xf32>
    %158 = vector.shape_cast %157 : vector<16xf32> to vector<16x1xf32>
    %cst_35 = arith.constant 2.000000e+01 : f32
    %159 = vector.broadcast %cst_35 : f32 to vector<16x1xf32>
    %160 = arith.divf %158, %159 : vector<16x1xf32>
    %161 = vector.broadcast %153 : vector<16x1xf32> to vector<16x20xf32>
    %162 = arith.subf %149, %161 : vector<16x20xf32>
    %cst_36 = arith.constant 9.99999974E-6 : f32
    %163 = vector.broadcast %cst_36 : f32 to vector<16x1xf32>
    %164 = arith.addf %160, %163 : vector<16x1xf32>
    %165 = math.rsqrt %164 : vector<16x1xf32>
    %166 = vector.broadcast %165 : vector<16x1xf32> to vector<16x20xf32>
    %167 = arith.mulf %162, %166 : vector<16x20xf32>
    %168 = arith.truncf %167 : vector<16x20xf32> to vector<16x20xbf16>
    %c0_37 = arith.constant 0 : index
    %c0_38 = arith.constant 0 : index
    %169 = vector.load %arg3[%c0_37, %c0_38] : memref<20x40xbf16, #tpu.memory_space<vmem>>, vector<20x40xbf16>
    %cst_39 = arith.constant dense<0.000000e+00> : vector<16x40xf32>
    %170 = tpu.matmul %168, %169, %cst_39 {dimension_numbers = #tpu.dot_dimension_numbers<[1], [0], [0], [1], [0, 0, 1, 1], [], []>} : vector<16x20xbf16>, vector<20x40xbf16>, vector<16x40xf32> -> vector<16x40xf32>
    %171 = vector.broadcast %5 : vector<1x40xf32> to vector<16x40xf32>
    %172 = arith.addf %170, %171 : vector<16x40xf32>
    %cst_40 = arith.constant 5.000000e-01 : f32
    %173 = vector.broadcast %cst_40 : f32 to vector<16x40xf32>
    %174 = arith.mulf %173, %172 : vector<16x40xf32>
    %cst_41 = arith.constant 0.707106769 : f32
    %175 = vector.broadcast %cst_41 : f32 to vector<16x40xf32>
    %176 = arith.mulf %172, %175 : vector<16x40xf32>
    %cst_42 = arith.constant 0.000000e+00 : f32
    %177 = vector.broadcast %cst_42 : f32 to vector<16x40xf32>
    %178 = arith.cmpf oge, %176, %177 : vector<16x40xf32>
    %cst_43 = arith.constant 1.000000e+00 : f32
    %cst_44 = arith.constant -1.000000e+00 : f32
    %179 = vector.broadcast %cst_43 : f32 to vector<16x40xf32>
    %180 = vector.broadcast %cst_44 : f32 to vector<16x40xf32>
    %181 = arith.select %178, %179, %180 : vector<16x40xi1>, vector<16x40xf32>
    %182 = math.absf %176 : vector<16x40xf32>
    %cst_45 = arith.constant 0.327591091 : f32
    %183 = vector.broadcast %cst_45 : f32 to vector<16x40xf32>
    %184 = arith.mulf %183, %182 : vector<16x40xf32>
    %cst_46 = arith.constant 1.000000e+00 : f32
    %185 = vector.broadcast %cst_46 : f32 to vector<16x40xf32>
    %186 = arith.addf %185, %184 : vector<16x40xf32>
    %cst_47 = arith.constant 1.000000e+00 : f32
    %187 = vector.broadcast %cst_47 : f32 to vector<16x40xf32>
    %188 = arith.divf %187, %186 : vector<16x40xf32>
    %cst_48 = arith.constant 1.06140542 : f32
    %189 = vector.broadcast %cst_48 : f32 to vector<16x40xf32>
    %190 = arith.mulf %189, %188 : vector<16x40xf32>
    %cst_49 = arith.constant -1.45315206 : f32
    %191 = vector.broadcast %cst_49 : f32 to vector<16x40xf32>
    %192 = arith.addf %190, %191 : vector<16x40xf32>
    %193 = arith.mulf %192, %188 : vector<16x40xf32>
    %cst_50 = arith.constant 1.42141378 : f32
    %194 = vector.broadcast %cst_50 : f32 to vector<16x40xf32>
    %195 = arith.addf %193, %194 : vector<16x40xf32>
    %196 = arith.mulf %195, %188 : vector<16x40xf32>
    %cst_51 = arith.constant -0.284496725 : f32
    %197 = vector.broadcast %cst_51 : f32 to vector<16x40xf32>
    %198 = arith.addf %196, %197 : vector<16x40xf32>
    %199 = arith.mulf %198, %188 : vector<16x40xf32>
    %cst_52 = arith.constant 0.254829586 : f32
    %200 = vector.broadcast %cst_52 : f32 to vector<16x40xf32>
    %201 = arith.addf %199, %200 : vector<16x40xf32>
    %202 = arith.mulf %201, %188 : vector<16x40xf32>
    %cst_53 = arith.constant 0.000000e+00 : f32
    %203 = vector.broadcast %cst_53 : f32 to vector<16x40xf32>
    %204 = arith.subf %203, %182 : vector<16x40xf32>
    %205 = arith.mulf %204, %182 : vector<16x40xf32>
    %206 = math.exp %205 : vector<16x40xf32>
    %207 = arith.mulf %202, %206 : vector<16x40xf32>
    %cst_54 = arith.constant 1.000000e+00 : f32
    %208 = vector.broadcast %cst_54 : f32 to vector<16x40xf32>
    %209 = arith.subf %208, %207 : vector<16x40xf32>
    %210 = arith.mulf %181, %209 : vector<16x40xf32>
    %cst_55 = arith.constant 1.000000e+00 : f32
    %211 = vector.broadcast %cst_55 : f32 to vector<16x40xf32>
    %212 = arith.addf %211, %210 : vector<16x40xf32>
    %213 = arith.mulf %174, %212 : vector<16x40xf32>
    %214 = arith.truncf %213 : vector<16x40xf32> to vector<16x40xbf16>
    %c0_56 = arith.constant 0 : index
    %c0_57 = arith.constant 0 : index
    %215 = vector.load %arg4[%c0_56, %c0_57] : memref<40x20xbf16, #tpu.memory_space<vmem>>, vector<40x20xbf16>
    %cst_58 = arith.constant dense<0.000000e+00> : vector<16x20xf32>
    %216 = tpu.matmul %214, %215, %cst_58 {dimension_numbers = #tpu.dot_dimension_numbers<[1], [0], [0], [1], [0, 0, 1, 1], [], []>} : vector<16x40xbf16>, vector<40x20xbf16>, vector<16x20xf32> -> vector<16x20xf32>
    %217 = arith.addf %149, %216 : vector<16x20xf32>
    %218 = vector.shape_cast %217 : vector<16x20xf32> to vector<2x8x20xf32>
    %c0_59 = arith.constant 0 : index
    %c0_60 = arith.constant 0 : index
    %c0_61 = arith.constant 0 : index
    %219 = vector.load %arg6[%c0_59, %c0_60, %c0_61] : memref<2x8x20xf32, #tpu.memory_space<vmem>>, vector<2x8x20xf32>
    tpu.vector_store %arg6[%c0_59, %c0_60, %c0_61], %218 {strides = array<i32>} : memref<2x8x20xf32, #tpu.memory_space<vmem>>, vector<2x8x20xf32>,
    return
  }
}

</mosaic_0001>

<bundles_post_ra>
// kernel: tpu_custom_call.1
= control target key start
LH: loop header
LB: loop body
LE: loop exit
PB: predicated region body
PF: predicated region fallthrough
CT: control target
= control target key end

     0   :  { %11 = vsyncpa [#allocation3], 0  ;;  %s1563_s0 = inlined_call_operand.vmem [shape: f32[2,8,20], index: 0, kind: input, shape index: {}]   ;;  %s1564_s1 = inlined_call_operand.vmem [shape: bf16[20,60], index: 1, kind: input, shape index: {}]   ;;  %s1565_s2 = inlined_call_operand.hbm [shape: bf16[20,20], index: 2, kind: input, shape index: {}]   ;;  %s1566_s3 = inlined_call_operand.hbm [shape: bf16[20,40], index: 3, kind: input, shape index: {}]   ;;  %s1567_s4 = inlined_call_operand.vmem [shape: bf16[40,20], index: 4, kind: input, shape index: {}]   ;;  %s1568_s5 = inlined_call_operand.vmem [shape: f32[3,60], index: 5, kind: input, shape index: {}]   ;;  %s1569_s6 = inlined_call_operand.hbm [shape: f32[2,8,20], index: 6, kind: output, shape index: {}]  }
   0x1   :  { %12 = vsyncpa [#allocation6], 0 }
   0x2   :  { %13 = vsyncpa [#allocation4], 0  ;;  %s1283_s21 = smov [#allocation2]   ;;  %s1211_s25 = scalar_lea.hbm %s1565_s2, 192 }
   0x3   :  { %s23_s22 = sshll.u32 %s1283_s21, 4  ;;  %p1212_p0 = scmp.ne.s32.totalorder %s1565_s2, %s1211_s25  ;;  %s24_s22 = int_to_ptr.vmem [resolvable:$true] %s23_s22 }
   0x4   :  { %p1215_p1 = scmp.lt.u32.totalorder %s1211_s25, %s1565_s2 }
   0x6   :  { %p1217_p2 = pnand %p1215_p1, %p1212_p0 }
   0x8   :  { %1220 = shalt.err (!%p1217_p2)
}
   0x9   :  { %s1221_s30 = scalar_lea.vmem %s24_s22, 192  ;;  %p1226_p4 = scmp.lt.s32.totalorder %s24_s22, %s24_s22 }
   0xa   :  { %p1222_p3 = scmp.ne.s32.totalorder %s24_s22, %s1221_s30  ;;  %p1227_p5 = scmp.lt.s32.totalorder %s1221_s30, %s1221_s30 }
   0xc   :  { %p1228_p6 = por %p1227_p5, %p1226_p4 }
   0xe   :  { %p1229_p7 = pnand %p1228_p6, %p1222_p3 }
  0x10   :  { %1232 = shalt.err (!%p1229_p7)
}
  0x11   :  { %s1284_s7 = smov 64   ;;  %s1285_s8 = smov 4  }
  0x12   :  { %29 = dma.hbm_to_vmem [thread:$0]  %s1565_s2, 192, %s24_s22, [#allocation3], %s1284_s7, %s1284_s7, %s1285_s8  }
  0x13   :  { %s1286_s11 = smov [#allocation5]   ;;  %s1233_s15 = scalar_lea.hbm %s1566_s3, 192 }
  0x14   :  { %s35_s12 = sshll.u32 %s1286_s11, 4  ;;  %p1234_p8 = scmp.ne.s32.totalorder %s1566_s3, %s1233_s15  ;;  %s36_s12 = int_to_ptr.vmem [resolvable:$true] %s35_s12 }
  0x15   :  { %p1237_p9 = scmp.lt.u32.totalorder %s1233_s15, %s1566_s3 }
  0x17   :  { %p1239_p10 = pnand %p1237_p9, %p1234_p8 }
  0x19   :  { %1242 = shalt.err (!%p1239_p10)
}
  0x1a   :  { %s1243_s20 = scalar_lea.vmem %s36_s12, 192  ;;  %p1248_p12 = scmp.lt.s32.totalorder %s36_s12, %s36_s12 }
  0x1b   :  { %p1244_p11 = scmp.ne.s32.totalorder %s36_s12, %s1243_s20  ;;  %p1249_p13 = scmp.lt.s32.totalorder %s1243_s20, %s1243_s20 }
  0x1d   :  { %p1250_p0 = por %p1249_p13, %p1248_p12 }
  0x1f   :  { %p1251_p1 = pnand %p1250_p0, %p1244_p11 }
  0x21   :  { %1254 = shalt.err (!%p1251_p1)
}
  0x22   :  { %41 = dma.hbm_to_vmem [thread:$0]  %s1566_s3, 192, %s36_s12, [#allocation6], %s1284_s7, %s1284_s7, %s1285_s8  }
  0x23   :  { %1277 = dma.done.wait [#allocation3], 192  }
  0x24   :  { %1278 = vsyncadd [#allocation3], 4294967104 }
  0x25   :  { %1279 = dma.done.wait [#allocation6], 192  }
  0x26   :  { %1280 = vsyncadd [#allocation6], 4294967104  ;;  %vm56_vm0 = vcmask 162816   ;;  %v1362_v0 = vld [vmem:[%s1563_s0] sm:$0xff]  ;;  %v1367_v1 = vld [vmem:[%s1563_s0 + $0x8] sm:$0xff]  ;;  %vm104_vm1 = vcmask 1041408   ;;  %v88_v18 = vlaneseq }
  0x27   :  { %v57_v2 = vsel %vm56_vm0, %v1362_v0, 0.0  ;;  %v60_v3 = vsel %vm56_vm0, %v1367_v1, 0.0  ;;  %v1178_v14 = vld [vmem:[%s1564_s1] sm:$0xff]   ;;  %v1179_v15 = vld [vmem:[%s1564_s1 + $0x8] ss:$0 sps:$4 sm:$0x33]  }
  0x28   :  { %58 = vadd.xlane.f32.xlu0 %v57_v2  ;;  %v1287_v16 = vmov 0.0   ;;  %vm1288_vm2 = vmmov 0   ;;  %v106_v17 = vsel %vm104_vm1, %v1179_v15, 0  ;;  %v1396_v19 = vand.u32 127, %v88_v18  ;;  %s1290_s1 = smov 20   ;;  %s1292_s30 = smov 40  }
  0x29   :  { %1046 = vmatprep.subr.bf16.mxu1 %v1287_v16  ;;  %1064 = vmatprep.subr.bf16.mxu0 %v1287_v16  ;;  %v1289_v20 = vmov 0   ;;  %v1426_v47 = vshrl.u32 %v88_v18, 7  ;;  %v1432_v49 = vld [vmem:[%s1568_s5] sm:$0x7]  ;;  %s1291_s5 = smov 108   ;;  %vm429_vm12 = vcmask 326656  }
  0x2a   :  { %1047 = vmatpush3.bf16.msra.mxu1 %v1178_v14  ;;  %1050 = vmatprep.mubr.msk.bf16.mxu1 %vm1288_vm2, %v1287_v16  ;;  %vm212_vm3 = vcmp.ge.s32.totalorder %v1396_v19, 4  ;;  %vm214_vm4 = vcmp.ge.s32.totalorder %v1396_v19, 8  ;;  %vm217_vm5 = vcmp.ge.s32.totalorder %v1396_v19, 12  ;;  %vm220_vm6 = vcmp.ge.s32.totalorder %v1396_v19, 16  ;;  %s1295_s7 = smov 88  }
  0x2b   :  { %1048 = vmatprep.subr.bf16.mxu1 %v1287_v16  ;;  %1070 = vmatprep.mubr.msk.bf16.mxu0 %vm1288_vm2, %v1287_v16  ;;  %v213_v21 = vsel %vm212_vm3, 1, %v1289_v20  ;;  %v215_v22 = vsel %vm214_vm4, 1, %v1289_v20  ;;  %v218_v23 = vsel %vm217_vm5, 1, %v1289_v20  ;;  %v221_v24 = vsel %vm220_vm6, 1, %v1289_v20 }
  0x2c   :  { %61 = vadd.xlane.f32.xlu0 %v60_v3  ;;  %v216_v25 = vadd.s32 %v215_v22, %v213_v21  ;;  %v1406_v26 = vadd.s32 %v221_v24, %v215_v22  ;;  %v90_v48 = vsub.s32 0, %v1426_v47  ;;  %vm443_vm13 = vcmp.ge.s32.totalorder %v1396_v19, 24 }
  0x2d   :  { %vm446_vm14 = vcmp.ge.s32.totalorder %v1396_v19, 32  ;;  %v1294_v19 = vmov 1.0  }
  0x2e   :  { %1049 = vmatpush3.bf16.msra.mxu1 %v106_v17  ;;  %v219_v27 = vadd.s32 %v218_v23, %v216_v25  ;;  %v91_v51 = vrot.slane %v1432_v49, %v90_v48 }
  0x2f   :  { %1054 = vmatprep.subr.bf16.mxu1 %v1287_v16 }
  0x30   :  { %v222_v28 = vadd.s32 %v221_v24, %v219_v27 }
  0x32   :  { %vm971_vm7 = vcmp.eq.s32.totalorder %v222_v28, 2  ;;  %vm972_vm8 = vcmp.eq.s32.totalorder %v222_v28, 3  ;;  %vm969_vm9 = vcmp.eq.s32.totalorder %v222_v28, 0  ;;  %vm970_vm10 = vcmp.eq.s32.totalorder %v222_v28, 1 }
  0x33   :  { %v976_v29 = vsel %vm971_vm7, 1.0, %v1287_v16  ;;  %v977_v30 = vsel %vm972_vm8, 1.0, %v1287_v16  ;;  %v974_v31 = vsel %vm969_vm9, 1.0, %v1287_v16  ;;  %v975_v32 = vsel %vm970_vm10, 1.0, %v1287_v16 }
  0x34   :  { %v1412_v33 = vpack.i.bf16 %v977_v30, %v976_v29  ;;  %v1414_v34 = vpack.i.bf16 %v975_v32, %v974_v31  ;;  %vm973_vm11 = vcmp.eq.s32.totalorder %v222_v28, 4  ;;  %vm565_vm9 = vcmask 1043456  }
  0x35   :  { %v1419_v35 = vsel %vm973_vm11, 1.0, %v1287_v16 }
  0x42   :  { %1159 = vrot.lane.b32.xlu0 %v1414_v34, %s1290_s1 }
  0xb5   :  { %v59_v4 = vpop.xlane.xlu0 %58 }
  0xb6   :  { %v64_v5 = vmul.f32 0.05, %v59_v4 }
  0xb8   :  { %v1374_v6 = vsub.f32 %v1362_v0, %v64_v5 }
  0xb9   :  { %v62_v7 = vpop.xlane.xlu0 %61 }
  0xba   :  { %v65_v8 = vmul.f32 0.05, %v62_v7  ;;  %v68_v9 = vmul.f32 %v1374_v6, %v1374_v6 }
  0xbc   :  { %v67_v10 = vsub.f32 %v1367_v1, %v65_v8  ;;  %v70_v11 = vsel %vm56_vm0, %v68_v9, 0.0 }
  0xbd   :  { %71 = vadd.xlane.f32.xlu1 %v70_v11  ;;  %v1160_v50 = vpop.permute.xlu0 %1159 }
  0xbe   :  { %v69_v12 = vmul.f32 %v67_v10, %v67_v10  ;;  %v1162_v52 = vunpack.i.h.bf16 %v1160_v50  ;;  %v1161_v53 = vunpack.i.l.bf16 %v1160_v50 }
  0xc0   :  { %v73_v13 = vsel %vm56_vm0, %v69_v12, 0.0 }
  0xc1   :  { %74 = vadd.xlane.f32.xlu1 %v73_v13 }
  0xd2   :  { %1164 = vrot.lane.b32.xlu1 %v1412_v33, %s1290_s1 }
  0xd6   :  { %251 = vrot.lane.b32.xlu1 %v1419_v35, %s1290_s1 }
 0x14a   :  { %v72_v36 = vpop.xlane.xlu1 %71 }
 0x14b   :  { %v76_v37 = vmul.f32 0.05, %v72_v36 }
 0x14d   :  { %v78_v38 = vadd.f32 1e-05, %v76_v37 }
 0x14e   :  { %v75_v39 = vpop.xlane.xlu1 %74 }
 0x14f   :  { %v77_v40 = vmul.f32 0.05, %v75_v39  ;;  %1187 = vrsqrt.f32 %v78_v38 }
 0x151   :  { %v79_v41 = vadd.f32 1e-05, %v77_v40 }
 0x152   :  { %v1165_v54 = vpop.permute.xlu1 %1164 }
 0x153   :  { %1189 = vrsqrt.f32 %v79_v41  ;;  %v1167_v56 = vunpack.i.h.bf16 %v1165_v54  ;;  %v1166_v57 = vunpack.i.l.bf16 %v1165_v54 }
 0x156   :  { %v252_v7 = vpop.permute.xlu1 %251 }
 0x159   :  { %v1188_v42 = vpop.eup %1187 }
 0x15a   :  { %v82_v44 = vmul.f32 %v1188_v42, %v1374_v6 }
 0x15d   :  { %v1190_v43 = vpop.eup %1189 }
 0x15e   :  { %v83_v45 = vmul.f32 %v1190_v43, %v67_v10 }
 0x160   :  { %v84_v46 = vpack.c.bf16 %v83_v45, %v82_v44 }
 0x162   :  { %1051 = vmatmul.mubr.msk.bf16.vlgmr.msra.gmra.mrb[0].mxu1 %vm56_vm0, %v84_v46 }
 0x163   :  { %1060 = vmatprep.mubr.msk.bf16.mxu1 %vm1288_vm2, %v1287_v16 }
 0x235   :  { %v142_v55 = vpop.f32.mrb[0].mxu1 }
 0x236   :  { %v1435_v58 = vadd.f32 %v142_v55, %v91_v51  ;;  %v1052_v59 = vpop.f32.mrb[1].mxu1  ;;  %v1293_v55 = vmov 1.0|1.0  }
 0x237   :  { %v145_v60 = vpop.f32.mrb[2].mxu1 }
 0x238   :  { %v259_v61 = vmul.f32 %v1162_v52, %v1435_v58  ;;  %v258_v62 = vmul.f32 %v1161_v53, %v1435_v58  ;;  %v1439_v63 = vadd.f32 %v145_v60, %v91_v51  ;;  %v1053_v2 = vpop.f32.mrb[3].mxu1  ;;  %v260_v5 = vmul.f32 %v1166_v57, %v1435_v58 }
 0x239   :  { %v261_v6 = vmul.f32 %v1167_v56, %v1435_v58  ;;  %v262_v12 = vmul.f32 %v252_v7, %v1435_v58  ;;  %v305_v37 = vpack.c.bf16 %v1435_v58, %v1435_v58  ;;  %v444_v51 = vsel %vm443_vm13, 1, %v1289_v20 }
 0x23a   :  { %v268_v3 = vpack.c.bf16 %v259_v61, %v258_v62  ;;  %v263_v4 = vmul.f32 %v1161_v53, %v1439_v63  ;;  %v264_v8 = vmul.f32 %v1162_v52, %v1439_v63  ;;  %v265_v10 = vmul.f32 %v1166_v57, %v1439_v63 }
 0x23b   :  { %v266_v11 = vmul.f32 %v1167_v56, %v1439_v63  ;;  %v269_v13 = vpack.c.bf16 %v261_v6, %v260_v5  ;;  %v267_v14 = vmul.f32 %v252_v7, %v1439_v63  ;;  %v270_v17 = vpack.c.bf16 %v262_v12, %v262_v12 }
 0x23c   :  { %310 = vrot.lane.b32.xlu1 %v268_v3, %s1291_s5  ;;  %v271_v9 = vpack.c.bf16 %v264_v8, %v263_v4  ;;  %v306_v38 = vpack.c.bf16 %v1439_v63, %v1439_v63  ;;  %v445_v52 = vadd.s32 %v444_v51, %v1406_v26  ;;  %v447_v53 = vsel %vm446_vm14, 1, %v1289_v20 }
 0x23d   :  { %v272_v15 = vpack.c.bf16 %v266_v11, %v265_v10  ;;  %v273_v18 = vpack.c.bf16 %v267_v14, %v267_v14 }
 0x23e   :  { %371 = vrot.lane.b32.xlu0 %v271_v9, %s1291_s5  ;;  %v448_v54 = vadd.s32 %v447_v53, %v445_v52 }
 0x240   :  { %312 = vrot.lane.b32.xlu1 %v269_v13, %s1291_s5  ;;  %vm981_vm15 = vcmp.eq.s32.totalorder %v448_v54, 0  ;;  %vm982_vm3 = vcmp.eq.s32.totalorder %v448_v54, 1  ;;  %vm983_vm5 = vcmp.eq.s32.totalorder %v448_v54, 2  ;;  %vm984_vm6 = vcmp.eq.s32.totalorder %v448_v54, 3 }
 0x241   :  { %vm1133_vm4 = vmpackc.low %vm982_vm3, %vm981_vm15  ;;  %vm985_vm8 = vcmp.eq.s32.totalorder %v448_v54, 4 }
 0x242   :  { %373 = vrot.lane.b32.xlu0 %v272_v15, %s1291_s5  ;;  %vm1137_vm7 = vmpackc.low %vm984_vm6, %vm983_vm5 }
 0x244   :  { %314 = vrot.lane.b32.xlu1 %v270_v17, %s1291_s5 }
 0x246   :  { %375 = vrot.lane.b32.xlu0 %v273_v18, %s1291_s5 }
 0x2ae   :  { %v311_v21 = vpop.permute.xlu1 %310 }
 0x2af   :  { %v320_v22 = vsel %vm56_vm0, %v311_v21, 0 }
 0x2b0   :  { %1055 = vmatpush3.bf16.xpose.msra.mxu1 %v320_v22  ;;  %v372_v23 = vpop.permute.xlu0 %371 }
 0x2b1   :  { %1056 = vmatprep.subr.bf16.mxu1 %v1287_v16  ;;  %v381_v24 = vsel %vm56_vm0, %v372_v23, 0 }
 0x2b2   :  { %1065 = vmatpush3.bf16.xpose.msra.mxu0 %v381_v24  ;;  %v313_v25 = vpop.permute.xlu1 %312 }
 0x2b3   :  { %1066 = vmatprep.subr.bf16.mxu0 %v1287_v16  ;;  %v323_v27 = vsel %vm56_vm0, %v313_v25, 0 }
 0x2b4   :  { %v374_v28 = vpop.permute.xlu0 %373 }
 0x2b5   :  { %v384_v29 = vsel %vm56_vm0, %v374_v28, 0 }
 0x2b6   :  { %v315_v30 = vpop.permute.xlu1 %314 }
 0x2b7   :  { %v326_v31 = vsel %vm56_vm0, %v315_v30, 0 }
 0x2b8   :  { %1057 = vmatpush3.bf16.xpose.msra.mxu1 %v323_v27  ;;  %v376_v32 = vpop.permute.xlu0 %375 }
 0x2b9   :  { %1058 = vmatprep.subr.bf16.mxu1 %v1287_v16  ;;  %v387_v36 = vsel %vm56_vm0, %v376_v32, 0 }
 0x2ba   :  { %1067 = vmatpush3.bf16.xpose.msra.mxu0 %v384_v29 }
 0x2bb   :  { %1068 = vmatprep.subr.bf16.mxu0 %v1287_v16 }
 0x2c0   :  { %1059 = vmatpush3.bf16.xpose.msra.mxu1 %v326_v31 }
 0x2c1   :  { %1134 = vmatprep.subr.msk.bf16.mxu1 %vm1133_vm4, %v1293_v55 }
 0x2c2   :  { %1069 = vmatpush3.bf16.xpose.msra.mxu0 %v387_v36 }
 0x2c3   :  { %1087 = vmatprep.subr.bf16.mxu0 %v1287_v16 }
 0x2c7   :  { %1061 = vmatmul.mubr.msk.bf16.vlgmr.msra.gmra.mrb[4].mxu1 %vm56_vm0, %v305_v37 }
 0x2c8   :  { %1136 = vmatpush3.bf16.msk.msra.mxu1 %vm1133_vm4, %v1293_v55 }
 0x2c9   :  { %1071 = vmatmul.mubr.msk.bf16.vlgmr.msra.gmra.mrb[0].mxu0 %vm56_vm0, %v306_v38  ;;  %1138 = vmatprep.subr.msk.bf16.mxu1 %vm1137_vm7, %v1293_v55 }
 0x2ca   :  { %1093 = vmatprep.mubr.msk.bf16.mxu0 %vm1288_vm2, %v1287_v16 }
 0x2cc   :  { %1140 = vmatpush3.bf16.msk.msra.mxu1 %vm1137_vm7, %v1293_v55 }
 0x2cd   :  { %1082 = vmatprep.subr.msk.mxu1 %vm985_vm8, %v1294_v19 }
 0x2d0   :  { %1083 = vmatpush3.msk.msra.mxu1 %vm985_vm8, %v1294_v19 }
 0x2d1   :  { %1097 = vmatprep.subr.bf16.mxu1 %v1287_v16 }
 0x39a   :  { %v362_v39 = vpop.f32.mrb[4].mxu1 }
 0x39b   :  { %v1062_v40 = vpop.f32.mrb[5].mxu1  ;;  %v430_v41 = vsel %vm429_vm12, %v362_v39, -inf }
 0x39c   :  { %431 = vmax.xlane.f32.xlu1 %v430_v41  ;;  %v365_v42 = vpop.f32.mrb[6].mxu1  ;;  %v423_v43 = vpop.f32.mrb[0].mxu0 }
 0x39d   :  { %v1063_v44 = vpop.f32.mrb[7].mxu1  ;;  %v1072_v45 = vpop.f32.mrb[1].mxu0  ;;  %v433_v46 = vsel %vm429_vm12, %v423_v43, -inf }
 0x39e   :  { %434 = vmax.xlane.f32.xlu0 %v433_v46  ;;  %v426_v48 = vpop.f32.mrb[2].mxu0  ;;  %v1180_v44 = vld [vmem:[#allocation2] sm:$0xff]   ;;  %v1181_v46 = vld [vmem:[#allocation2 + $0x8] ss:$0 sps:$4 sm:$0x33]  }
 0x39f   :  { %v1073_v50 = vpop.f32.mrb[3].mxu0  ;;  %v687_v48 = vsel %vm104_vm1, %v1181_v46, 0 }
 0x3ad   :  { %1174 = vrot.lane.b32.xlu1 %v1412_v33, %s1292_s30 }
 0x3b1   :  { %282 = vrot.lane.b32.xlu1 %v1419_v35, %s1292_s30 }
 0x3b4   :  { %1169 = vrot.lane.b32.xlu0 %v1414_v34, %s1292_s30 }
 0x429   :  { %v432_v20 = vpop.xlane.xlu1 %431 }
 0x42a   :  { %v436_v26 = vsub.f32 %v362_v39, %v432_v20 }
 0x42b   :  { %v435_v35 = vpop.xlane.xlu0 %434 }
 0x42c   :  { %v438_v33 = vmul.f32 1.442695, %v436_v26  ;;  %v437_v56 = vsub.f32 %v423_v43, %v435_v35 }
 0x42d   :  { %v1175_v57 = vpop.permute.xlu1 %1174 }
 0x42e   :  { %1191 = vpow2.f32 %v438_v33  ;;  %v440_v59 = vmul.f32 1.442695, %v437_v56  ;;  %v1177_v60 = vunpack.i.h.bf16 %v1175_v57  ;;  %v1176_v34 = vunpack.i.l.bf16 %v1175_v57 }
 0x42f   :  { %v1170_v61 = vpop.permute.xlu0 %1169  ;;  %v672_v33 = vsub.s32 1, %v1426_v47 }
 0x430   :  { %1193 = vpow2.f32 %v440_v59  ;;  %v1172_v62 = vunpack.i.h.bf16 %v1170_v61  ;;  %v1171_v2 = vunpack.i.l.bf16 %v1170_v61  ;;  %v292_v7 = vmul.f32 %v1177_v60, %v1435_v58 }
 0x431   :  { %v297_v8 = vmul.f32 %v1177_v60, %v1439_v63  ;;  %v291_v9 = vmul.f32 %v1176_v34, %v1435_v58  ;;  %v296_v10 = vmul.f32 %v1176_v34, %v1439_v63  ;;  %v283_v13 = vpop.permute.xlu1 %282  ;;  %v673_v35 = vrot.slane %v1432_v49, %v672_v33 }
 0x432   :  { %v290_v3 = vmul.f32 %v1172_v62, %v1435_v58  ;;  %v295_v4 = vmul.f32 %v1172_v62, %v1439_v63  ;;  %v289_v5 = vmul.f32 %v1171_v2, %v1435_v58  ;;  %v294_v6 = vmul.f32 %v1171_v2, %v1439_v63 }
 0x433   :  { %v293_v15 = vmul.f32 %v283_v13, %v1435_v58  ;;  %v298_v17 = vmul.f32 %v283_v13, %v1439_v63  ;;  %v303_v18 = vpack.c.bf16 %v297_v8, %v296_v10  ;;  %v300_v21 = vpack.c.bf16 %v292_v7, %v291_v9  ;;  %v1182_v13 = vld [vmem:[#allocation5] sm:$0xff]  }
 0x434   :  { %v299_v11 = vpack.c.bf16 %v290_v3, %v289_v5  ;;  %v302_v12 = vpack.c.bf16 %v295_v4, %v294_v6 }
 0x435   :  { %v301_v23 = vpack.c.bf16 %v293_v15, %v293_v15  ;;  %v304_v24 = vpack.c.bf16 %v298_v17, %v298_v17 }
 0x436   :  { %554 = vrot.lane.b32.xlu0 %v299_v11, %s1295_s7  ;;  %612 = vrot.lane.b32.xlu1 %v302_v12, %s1295_s7 }
 0x438   :  { %v1192_v14 = vpop.eup %1191 }
 0x439   :  { %1084 = vmatprep.mubr.msk.f32.mxu1 %vm429_vm12, %v1192_v14 }
 0x43a   :  { %v1194_v22 = vpop.eup %1193  ;;  %614 = vrot.lane.b32.xlu1 %v303_v18, %s1295_s7  ;;  %556 = vrot.lane.b32.xlu0 %v300_v21, %s1295_s7 }
 0x43b   :  { %1085 = vmatmul.mubr.msk.f32.vlgmr.msra.gmra.mrb[8].mxu1 %vm429_vm12, %v1194_v22 }
 0x43c   :  { %1103 = vmatprep.mubr.msk.bf16.mxu1 %vm1288_vm2, %v1287_v16 }
 0x43e   :  { %616 = vrot.lane.b32.xlu1 %v304_v24, %s1295_s7  ;;  %558 = vrot.lane.b32.xlu0 %v301_v23, %s1295_s7 }
 0x4a8   :  { %v555_v25 = vpop.permute.xlu0 %554  ;;  %v613_v58 = vpop.permute.xlu1 %612 }
 0x4a9   :  { %1088 = vmatpush3.bf16.msra.mxu0 %v555_v25  ;;  %1098 = vmatpush3.bf16.msra.mxu1 %v613_v58 }
 0x4aa   :  { %1089 = vmatprep.subr.bf16.mxu0 %v1287_v16  ;;  %1099 = vmatprep.subr.bf16.mxu1 %v1287_v16 }
 0x4ac   :  { %v615_v63 = vpop.permute.xlu1 %614  ;;  %v557_v27 = vpop.permute.xlu0 %556 }
 0x4ad   :  { %1090 = vmatpush3.bf16.msra.mxu0 %v557_v27  ;;  %1100 = vmatpush3.bf16.msra.mxu1 %v615_v63 }
 0x4ae   :  { %1091 = vmatprep.subr.bf16.mxu0 %v1287_v16  ;;  %1101 = vmatprep.subr.bf16.mxu1 %v1287_v16 }
 0x4b0   :  { %v617_v28 = vpop.permute.xlu1 %616  ;;  %v559_v29 = vpop.permute.xlu0 %558 }
 0x4b1   :  { %v624_v30 = vsel %vm565_vm9, %v617_v28, 0  ;;  %v567_v31 = vsel %vm565_vm9, %v559_v29, 0  ;;  %v1184_v29 = vld [vmem:[%s1567_s4] sm:$0xff]  }
 0x4b2   :  { %1092 = vmatpush3.bf16.msra.mxu0 %v567_v31  ;;  %1102 = vmatpush3.bf16.msra.mxu1 %v624_v30  ;;  %v1185_v30 = vld [vmem:[%s1567_s4 + $0x8] sm:$0xff]   ;;  %v1186_v31 = vld [vmem:[%s1567_s4 + $0x10] ss:$0 sps:$4 sm:$0xff]   ;;  %s1297_s4 = smov [#allocation7]  }
 0x4b3   :  { %1107 = vmatprep.subr.bf16.mxu0 %v1287_v16  ;;  %1115 = vmatprep.subr.bf16.mxu1 %v1287_v16  ;;  %s953_s14 = sshll.u32 %s1297_s4, 4  ;;  %s954_s14 = int_to_ptr.vmem [resolvable:$true] %s953_s14 }
 0x4b4   :  { %s1255_s15 = scalar_lea.vmem %s954_s14, 256  ;;  %p1260_p3 = scmp.lt.s32.totalorder %s954_s14, %s954_s14 }
 0x4b5   :  { %p1256_p2 = scmp.ne.s32.totalorder %s954_s14, %s1255_s15  ;;  %p1261_p4 = scmp.lt.s32.totalorder %s1255_s15, %s1255_s15 }
 0x4b7   :  { %p1262_p5 = por %p1261_p4, %p1260_p3 }
 0x4b9   :  { %p1263_p6 = pnand %p1262_p5, %p1256_p2 }
 0x50e   :  { %v1086_v32 = vpop.f32.mrb[8].mxu1 }
 0x50f   :  { %v542_v36 = vadd.f32 1e-30, %v1086_v32  ;;  %v536_v37 = vpop.f32.mrb[9].mxu1  ;;  %v901_v32 = vsel %vm565_vm9, %v1186_v31, 0 }
 0x510   :  { %v537_v38 = vadd.f32 1e-30, %v536_v37 }
 0x511   :  { %1195 = vrcp.f32 %v542_v36  ;;  %v764_v36 = vsub.s32 2, %v1426_v47 }
 0x512   :  { %1197 = vrcp.f32 %v537_v38 }
 0x513   :  { %v765_v37 = vrot.slane %v1432_v49, %v764_v36 }
 0x51b   :  { %v1196_v39 = vpop.eup %1195 }
 0x51c   :  { %v1198_v40 = vpop.eup %1197  ;;  %v548_v41 = vmul.f32 %v1196_v39, %v1194_v22 }
 0x51d   :  { %v547_v42 = vmul.f32 %v1198_v40, %v1192_v14  ;;  %v1183_v14 = vld [vmem:[#allocation5 + $0x8] ss:$0 sps:$4 sm:$0x33]  }
 0x51e   :  { %v550_v43 = vpack.c.bf16 %v548_v41, %v548_v41  ;;  %v779_v15 = vsel %vm104_vm1, %v1183_v14, 0 }
 0x51f   :  { %v549_v45 = vpack.c.bf16 %v547_v42, %v547_v42 }
 0x520   :  { %1104 = vmatmul.mubr.msk.bf16.vlgmr.msra.gmra.mrb[12].mxu1 %vm429_vm12, %v550_v43 }
 0x521   :  { %1094 = vmatmul.mubr.msk.bf16.vlgmr.msra.gmra.mrb[4].mxu0 %vm429_vm12, %v549_v45  ;;  %1119 = vmatprep.mubr.msk.bf16.mxu1 %vm1288_vm2, %v1287_v16 }
 0x522   :  { %1108 = vmatpush3.bf16.msra.mxu0 %v1180_v44  ;;  %1111 = vmatprep.mubr.msk.bf16.mxu0 %vm1288_vm2, %v1287_v16 }
 0x523   :  { %1109 = vmatprep.subr.bf16.mxu0 %v1287_v16  ;;  %1116 = vmatpush3.bf16.msra.mxu1 %v1182_v13 }
 0x524   :  { %1117 = vmatprep.subr.bf16.mxu1 %v1287_v16 }
 0x526   :  { %1110 = vmatpush3.bf16.msra.mxu0 %v687_v48 }
 0x527   :  { %1123 = vmatprep.subr.bf16.mxu0 %v1287_v16  ;;  %1118 = vmatpush3.bf16.msra.mxu1 %v779_v15  ;;  %v1296_v15 = vmov -1.0  }
 0x5f3   :  { %v660_v50 = vpop.f32.mrb[12].mxu1 }
 0x5f4   :  { %v603_v51 = vpop.f32.mrb[4].mxu0  ;;  %v1105_v52 = vpop.f32.mrb[13].mxu1 }
 0x5f5   :  { %v666_v53 = vpack.c.bf16 %v660_v50, %v603_v51  ;;  %v1095_v54 = vpop.f32.mrb[5].mxu0  ;;  %v663_v55 = vpop.f32.mrb[14].mxu1 }
 0x5f6   :  { %v606_v19 = vpop.f32.mrb[6].mxu0  ;;  %v1106_v20 = vpop.f32.mrb[15].mxu1 }
 0x5f7   :  { %v1096_v26 = vpop.f32.mrb[7].mxu0  ;;  %1112 = vmatmul.mubr.msk.bf16.vlgmr.msra.gmra.mrb[8].mxu0 %vm56_vm0, %v666_v53 }
 0x5f8   :  { %1129 = vmatprep.mubr.msk.bf16.mxu0 %vm1288_vm2, %v1287_v16  ;;  %1124 = vmatpush3.bf16.msra.mxu0 %v1184_v29 }
 0x5f9   :  { %1125 = vmatprep.subr.bf16.mxu0 %v1287_v16 }
 0x5fc   :  { %1126 = vmatpush3.bf16.msra.mxu0 %v1185_v30 }
 0x5fd   :  { %1127 = vmatprep.subr.bf16.mxu0 %v1287_v16 }
 0x600   :  { %1128 = vmatpush3.bf16.msra.mxu0 %v901_v32 }
 0x6ca   :  { %v723_v56 = vpop.f32.mrb[8].mxu0 }
 0x6cb   :  { %v724_v57 = vadd.f32 %v723_v56, %v673_v35  ;;  %v1113_v59 = vpop.f32.mrb[9].mxu0 }
 0x6cc   :  { %v726_v60 = vpop.f32.mrb[10].mxu0 }
 0x6cd   :  { %v1516_v61 = vadd.f32 %v724_v57, %v1362_v0  ;;  %v727_v34 = vadd.f32 %v726_v60, %v673_v35  ;;  %v1114_v62 = vpop.f32.mrb[11].mxu0 }
 0x6cf   :  { %v1519_v2 = vadd.f32 %v727_v34, %v1367_v1  ;;  %v732_v3 = vsel %vm56_vm0, %v1516_v61, 0.0 }
 0x6d0   :  { %733 = vadd.xlane.f32.xlu0 %v732_v3 }
 0x6d1   :  { %v735_v4 = vsel %vm56_vm0, %v1519_v2, 0.0 }
 0x6d2   :  { %736 = vadd.xlane.f32.xlu1 %v735_v4 }
 0x75d   :  { %v734_v5 = vpop.xlane.xlu0 %733 }
 0x75e   :  { %v738_v6 = vmul.f32 0.05, %v734_v5 }
 0x75f   :  { %v737_v7 = vpop.xlane.xlu1 %736 }
 0x760   :  { %v740_v8 = vsub.f32 %v1516_v61, %v738_v6  ;;  %v739_v0 = vmul.f32 0.05, %v737_v7 }
 0x762   :  { %v741_v9 = vsub.f32 %v1519_v2, %v739_v0  ;;  %v742_v10 = vmul.f32 %v740_v8, %v740_v8 }
 0x764   :  { %v744_v1 = vsel %vm56_vm0, %v742_v10, 0.0  ;;  %v743_v11 = vmul.f32 %v741_v9, %v741_v9 }
 0x765   :  { %745 = vadd.xlane.f32.xlu0 %v744_v1 }
 0x766   :  { %v747_v12 = vsel %vm56_vm0, %v743_v11, 0.0 }
 0x769   :  { %748 = vadd.xlane.f32.xlu0 %v747_v12 }
 0x7f2   :  { %v746_v17 = vpop.xlane.xlu0 %745 }
 0x7f3   :  { %v750_v18 = vmul.f32 0.05, %v746_v17 }
 0x7f5   :  { %v752_v21 = vadd.f32 1e-05, %v750_v18 }
 0x7f6   :  { %v749_v22 = vpop.xlane.xlu0 %748 }
 0x7f7   :  { %v751_v23 = vmul.f32 0.05, %v749_v22  ;;  %1199 = vrsqrt.f32 %v752_v21 }
 0x7f9   :  { %v753_v24 = vadd.f32 1e-05, %v751_v23 }
 0x7fb   :  { %1201 = vrsqrt.f32 %v753_v24 }
 0x801   :  { %v1200_v25 = vpop.eup %1199 }
 0x802   :  { %v756_v63 = vmul.f32 %v1200_v25, %v740_v8 }
 0x805   :  { %v1202_v58 = vpop.eup %1201 }
 0x806   :  { %v757_v27 = vmul.f32 %v1202_v58, %v741_v9 }
 0x808   :  { %v758_v28 = vpack.c.bf16 %v757_v27, %v756_v63 }
 0x80a   :  { %1120 = vmatmul.mubr.msk.bf16.vlgmr.msra.gmra.mrb[16].mxu1 %vm56_vm0, %v758_v28 }
 0x8dd   :  { %v815_v38 = vpop.f32.mrb[16].mxu1 }
 0x8de   :  { %v816_v39 = vadd.f32 %v815_v38, %v765_v37  ;;  %v1121_v40 = vpop.f32.mrb[17].mxu1 }
 0x8df   :  { %v818_v41 = vpop.f32.mrb[18].mxu1 }
 0x8e0   :  { %v824_v42 = vmul.f32 0.70710677, %v816_v39  ;;  %v819_v43 = vadd.f32 %v818_v41, %v765_v37  ;;  %v1122_v44 = vpop.f32.mrb[19].mxu1  ;;  %v822_v58 = vmul.f32 0.5, %v816_v39 }
 0x8e2   :  { %v830_v45 = vand.u32 2147483647, %v824_v42  ;;  %v825_v16 = vmul.f32 0.70710677, %v819_v43  ;;  %vm826_vm1 = vcmp.ge.f32.partialorder %v824_v42, 0.0  ;;  %v823_v63 = vmul.f32 0.5, %v819_v43 }
 0x8e3   :  { %v828_v17 = vsel %vm826_vm1, 1.0, %v1296_v15 }
 0x8e4   :  { %v832_v46 = vmul.f32 0.3275911, %v830_v45  ;;  %v831_v48 = vand.u32 2147483647, %v825_v16  ;;  %v858_v53 = vsub.f32 0.0, %v830_v45  ;;  %vm827_vm2 = vcmp.ge.f32.partialorder %v825_v16, 0.0 }
 0x8e5   :  { %v829_v23 = vsel %vm827_vm2, 1.0, %v1296_v15 }
 0x8e6   :  { %v834_v50 = vadd.f32 1.0, %v832_v46  ;;  %v833_v51 = vmul.f32 0.3275911, %v831_v48  ;;  %v859_v47 = vsub.f32 0.0, %v831_v48  ;;  %v860_v49 = vmul.f32 %v858_v53, %v830_v45 }
 0x8e8   :  { %1203 = vrcp.f32 %v834_v50  ;;  %v835_v52 = vadd.f32 1.0, %v833_v51  ;;  %v861_v26 = vmul.f32 %v859_v47, %v831_v48  ;;  %v862_v33 = vmul.f32 1.442695, %v860_v49 }
 0x8ea   :  { %1205 = vrcp.f32 %v835_v52  ;;  %v864_v60 = vmul.f32 1.442695, %v861_v26 }
 0x8eb   :  { %1207 = vpow2.f32 %v862_v33 }
 0x8ec   :  { %1209 = vpow2.f32 %v864_v60 }
 0x8f2   :  { %v1204_v54 = vpop.eup %1203 }
 0x8f3   :  { %v840_v55 = vmul.f32 1.0614054, %v1204_v54 }
 0x8f4   :  { %v1206_v19 = vpop.eup %1205 }
 0x8f5   :  { %v842_v20 = vadd.f32 -1.4531521, %v840_v55  ;;  %v841_v35 = vmul.f32 1.0614054, %v1206_v19  ;;  %v1208_v10 = vpop.eup %1207 }
 0x8f6   :  { %v1210_v13 = vpop.eup %1209 }
 0x8f7   :  { %v844_v56 = vmul.f32 %v1204_v54, %v842_v20  ;;  %v843_v57 = vadd.f32 -1.4531521, %v841_v35 }
 0x8f9   :  { %v846_v59 = vadd.f32 1.4214138, %v844_v56  ;;  %v845_v34 = vmul.f32 %v1206_v19, %v843_v57 }
 0x8fb   :  { %v848_v62 = vmul.f32 %v1204_v54, %v846_v59  ;;  %v847_v3 = vadd.f32 1.4214138, %v845_v34 }
 0x8fd   :  { %v850_v4 = vadd.f32 -0.28449672, %v848_v62  ;;  %v849_v5 = vmul.f32 %v1206_v19, %v847_v3 }
 0x8ff   :  { %v852_v6 = vmul.f32 %v1204_v54, %v850_v4  ;;  %v851_v7 = vadd.f32 -0.28449672, %v849_v5 }
 0x901   :  { %v854_v8 = vadd.f32 0.2548296, %v852_v6  ;;  %v853_v0 = vmul.f32 %v1206_v19, %v851_v7 }
 0x903   :  { %v856_v9 = vmul.f32 %v1204_v54, %v854_v8  ;;  %v855_v1 = vadd.f32 0.2548296, %v853_v0 }
 0x905   :  { %v866_v11 = vmul.f32 %v1208_v10, %v856_v9  ;;  %v857_v12 = vmul.f32 %v1206_v19, %v855_v1 }
 0x907   :  { %v868_v14 = vsub.f32 1.0, %v866_v11  ;;  %v867_v18 = vmul.f32 %v1210_v13, %v857_v12 }
 0x909   :  { %v870_v21 = vmul.f32 %v868_v14, %v828_v17  ;;  %v869_v22 = vsub.f32 1.0, %v867_v18 }
 0x90b   :  { %v872_v24 = vadd.f32 1.0, %v870_v21  ;;  %v871_v25 = vmul.f32 %v869_v22, %v829_v23 }
 0x90d   :  { %v873_v27 = vadd.f32 1.0, %v871_v25  ;;  %v874_v28 = vmul.f32 %v872_v24, %v822_v58 }
 0x90f   :  { %v875_v29 = vmul.f32 %v873_v27, %v823_v63 }
 0x911   :  { %v876_v30 = vpack.c.bf16 %v875_v29, %v874_v28 }
 0x913   :  { %1130 = vmatmul.mubr.msk.bf16.vlgmr.msra.gmra.mrb[12].mxu0 %vm429_vm12, %v876_v30 }
 0x9e6   :  { %v937_v31 = vpop.f32.mrb[12].mxu0 }
 0x9e7   :  { %v944_v32 = vadd.f32 %v937_v31, %v1516_v61  ;;  %v1131_v36 = vpop.f32.mrb[13].mxu0 }
 0x9e8   :  { %v940_v37 = vpop.f32.mrb[14].mxu0 }
 0x9e9   :  { %946 = vst.msk [vmem:[#allocation7] sm:$0xff] %vm56_vm0, %v944_v32  ;;  %v945_v38 = vadd.f32 %v940_v37, %v1519_v2  ;;  %v1132_v39 = vpop.f32.mrb[15].mxu0 }
 0x9eb   :  { %947 = vst.msk [vmem:[#allocation7 + $0x8] sm:$0xff] %vm56_vm0, %v945_v38 }
 0x9ec   :  { %1266 = shalt.err (!%p1263_p6)
}
 0x9ed   :  { %s1267_s18 = scalar_lea.hbm %s1569_s6, 256 }
 0x9ee   :  { %p1268_p7 = scmp.ne.s32.totalorder %s1569_s6, %s1267_s18  ;;  %p1271_p8 = scmp.lt.u32.totalorder %s1267_s18, %s1569_s6 }
 0x9f0   :  { %p1273_p9 = pnand %p1271_p8, %p1268_p7 }
 0x9f2   :  { %1276 = shalt.err (!%p1273_p9)
}
 0x9f3   :  { %s1298_s22 = smov 128   ;;  %s1299_s23 = smov 8  }
 0x9f4   :  { %959 = dma.vmem_to_hbm [thread:$0]  %s954_s14, 256, %s1569_s6, [#allocation4], %s1298_s22, %s1298_s22, %s1299_s23  }
 0x9f5   :  { %1281 = dma.done.wait [#allocation4], 256  }
 0x9f6   :  { %1282 = vsyncadd [#allocation4], 4294967040 }
 0x9f7   :  { %963 = vsyncpa [#allocation3], 1 }
 0x9f8   :  { %964 = vsyncpa [#allocation6], 1 }
 0x9f9   :  { %965 = vsyncpa [#allocation4], 1 }

</bundles_post_ra>
